<compile_context>
chip_gen: v5e
topology: v5e:2x2
jax: 0.10.0
libtpu: 0.0.40
codegen_flags: <defaults>
</compile_context>

<pallas_src>
import jax
import jax.numpy as jnp
from jax import lax
from jax.experimental import pallas as pl
from jax.experimental.pallas import tpu as pltpu

# LIFParameters(tau_syn_inv=0.5, tau_mem_inv=0.5, v_th=1.0, v_reset=0.0)
TAU_SYN_INV = 0.5
TAU_MEM_INV = 0.5
V_TH = 1.0
V_RESET = 0.0
INHIBITION_STRENGTH = -5.0


# --------------------------------------------------------------------------
# Small helpers: rounding, padding, VMEM budgeting, batch-tile picking.
# --------------------------------------------------------------------------
def _round_up(n, m):
    return ((n + m - 1) // m) * m


def _pad_lanes(a, n_pad):
    """Zero-pad the last (lane) axis to n_pad columns."""
    n = a.shape[-1]
    if n == n_pad:
        return a
    pad = [(0, 0)] * (a.ndim - 1) + [(0, n_pad - n)]
    return jnp.pad(a, pad)


def _sublane_align(itemsize):
    # f32 tiles are (8,128); bf16 pack 2 rows/sublane -> (16,128); int8 -> 32.
    return {4: 8, 2: 16, 1: 32}.get(int(itemsize), 8)


def _vmem_budget():
    """(budget_bytes, vmem_limit_bytes) sized for the current TPU generation."""
    phys = 0
    try:
        phys = int(pltpu.get_tpu_info().vmem_capacity_bytes)
    except Exception:
        phys = 0
    if phys <= 0:
        phys = 64 << 20                    # conservative (v7x-class) fallback
    if phys <= (64 << 20):                 # v7x: 64 MiB physical per TC
        limit = 40 << 20
    else:                                  # v5e/v6e: 128 MiB physical
        limit = 64 << 20
    budget = (limit * 3) // 4              # headroom for Mosaic internal scratch
    return budget, limit


def _pick_tb(batch, per_row_bytes, budget_bytes, *, align=8, min_grid=2,
             cap=1024):
    """Largest batch tile whose true VMEM footprint fits the budget.

    Also keeps at least `min_grid` batch tiles (when batch allows) so the
    'parallel' grid axis can be sharded across v7x's two TensorCores; this is
    one extra ~0.35us grid step on single-TC v5e/v6e, i.e. negligible.
    """
    tb = min(batch, cap, max(align, budget_bytes // max(per_row_bytes, 1)))
    if min_grid > 1 and batch >= min_grid * align:
        tb = min(tb, pl.cdiv(batch, min_grid))
    if tb >= batch:
        return batch                       # single full tile (no align needed)
    return max(align, tb - tb % align)     # partial tiles must be sublane-aligned


# --------------------------------------------------------------------------
# Shared per-tile step (pure VPU/XLU work, no MXU).
# --------------------------------------------------------------------------
def _lif_li_step(x, v, i):
    """One LIF step + per-row winner-take-all lateral inhibition.

    x, v, i: (TB, N) float32 tiles.  Returns (z, v_final, i_new)."""
    i_new = i + TAU_SYN_INV * (x - i)
    v_new = v + TAU_MEM_INV * (i_new - v)
    spiked = v_new >= V_TH
    z = spiked.astype(v_new.dtype)
    v_after = jnp.where(spiked, jnp.float32(V_RESET), v_new)

    n = x.shape[-1]
    # Winner = first spiked neuron attaining the largest pre-reset potential
    # (matches torch.max tie-breaking over the sorted nonzero index set).
    masked_v = jnp.where(spiked, v_new, jnp.float32(-jnp.inf))
    max_v = jnp.max(masked_v, axis=-1, keepdims=True)          # XLU reduce #1
    idx = lax.broadcasted_iota(jnp.int32, x.shape, x.ndim - 1)
    # Equality with a finite max already implies "spiked" on the any_spike path.
    winner_cand = masked_v == max_v
    winner_idx = jnp.min(jnp.where(winner_cand, idx, jnp.int32(n)),
                         axis=-1, keepdims=True)                # XLU reduce #2
    winner_mask = idx == winner_idx
    any_spike = max_v >= V_TH                                   # == any(spiked)

    v_final = jnp.where(
        any_spike,
        jnp.where(winner_mask, v_after, jnp.float32(INHIBITION_STRENGTH)),
        v_after,
    )
    return z, v_final, i_new


# --------------------------------------------------------------------------
# Single-step kernel (matches LateralInhibitionLIFCell.forward exactly).
# --------------------------------------------------------------------------
def _lif_li_kernel(x_ref, v_ref, i_ref, z_out, v_out, i_out):
    z, v_final, i_new = _lif_li_step(x_ref[...], v_ref[...], i_ref[...])
    z_out[...] = z.astype(z_out.dtype)
    v_out[...] = v_final
    i_out[...] = i_new


def lateral_inhibition_lif_cell(x, v, i, *, tb=None, z_dtype=jnp.float32):
    """x, v, i: (B, N) float32. Returns (z, new_v, new_i)."""
    B, N = x.shape
    Np = _round_up(N, 128)                 # lane-dense outputs (unmasked vst)
    xp, vp, ip = (_pad_lanes(a, Np) for a in (x, v, i))

    z_bytes = jnp.dtype(z_dtype).itemsize
    align = _sublane_align(min(4, z_bytes)) if z_bytes < 4 else 8
    budget, limit = _vmem_budget()
    if tb is None:
        # Double-buffered streams per grid step: x,v,i in + z,v,i out.
        per_row = 2 * Np * (3 * 4 + 2 * 4 + z_bytes)
        tb = _pick_tb(B, per_row, budget, align=align)

    grid = (pl.cdiv(B, tb),)
    spec = pl.BlockSpec((tb, Np), lambda b: (b, 0))
    out_shape = (jax.ShapeDtypeStruct((B, Np), z_dtype),
                 jax.ShapeDtypeStruct((B, Np), jnp.float32),
                 jax.ShapeDtypeStruct((B, Np), jnp.float32))
    z, new_v, new_i = pl.pallas_call(
        _lif_li_kernel,
        out_shape=out_shape,
        grid=grid,
        in_specs=[spec, spec, spec],
        out_specs=(spec, spec, spec),
        compiler_params=pltpu.CompilerParams(
            dimension_semantics=("parallel",),
            vmem_limit_bytes=limit),
    )(xp, vp, ip)
    if Np != N:
        z, new_v, new_i = z[:, :N], new_v[:, :N], new_i[:, :N]
    return z, new_v, new_i


# --------------------------------------------------------------------------
# Time-fused kernel: xs (T, B, N).  v/i live in VMEM scratch across ALL
# timesteps of a batch tile; each grid step processes a chunk of TT timesteps
# (amortizes per-grid-step overhead, larger contiguous x/z DMAs).
# --------------------------------------------------------------------------
def _lif_li_seq_kernel(x_ref, v0_ref, i0_ref, z_out, v_out, i_out,
                       v_sc, i_sc):
    tc = pl.program_id(1)                  # time-chunk index (innermost axis)

    @pl.when(tc == 0)
    def _():
        v_sc[...] = v0_ref[...]
        i_sc[...] = i0_ref[...]

    tt = x_ref.shape[0]                    # static chunk length

    def body(t, carry):
        v, i = carry
        z, v_new, i_new = _lif_li_step(x_ref[t], v, i)
        z_out[t] = z.astype(z_out.dtype)
        return (v_new, i_new)

    v_f, i_f = lax.fori_loop(0, tt, body, (v_sc[...], i_sc[...]), unroll=True)
    v_sc[...] = v_f
    i_sc[...] = i_f

    # v_out/i_out block index is constant across the (innermost) t axis, so the
    # VMEM output block stays resident and is only flushed to HBM when the
    # batch tile changes -> writing at the last time-chunk suffices.
    # NOTE: this relies on t remaining the innermost grid axis.
    @pl.when(tc == pl.num_programs(1) - 1)
    def _():
        v_out[...] = v_sc[...]
        i_out[...] = i_sc[...]


def lateral_inhibition_lif_sequence(xs, v0, i0, *, tb=None, tt=None,
                                    z_dtype=jnp.float32):
    """xs: (T, B, N); v0, i0: (B, N).  Returns (zs (T,B,N), v_T, i_T)."""
    T, B, N = xs.shape
    Np = _round_up(N, 128)
    xs_p = _pad_lanes(xs, Np)
    v0_p = _pad_lanes(v0, Np)
    i0_p = _pad_lanes(i0, Np)

    z_bytes = jnp.dtype(z_dtype).itemsize
    align = _sublane_align(z_bytes) if z_bytes < 4 else 8

    # Timestep chunk: must divide T so no padded (garbage) steps reach the
    # v/i carry; 8-16 steps already amortizes the per-grid-step overhead.
    if tt is None:
        tt_max = min(T, 16)
        tt = max(d for d in range(1, tt_max + 1) if T % d == 0)

    budget, limit = _vmem_budget()
    if tb is None:
        # True steady-state VMEM footprint per batch row (double-buffered
        # streams + single-buffered scratch carries):
        #   x: 2*tt*4   z: 2*tt*z_bytes   v0,i0,v_out,i_out: 4 * (2*4)
        #   v_sc,i_sc: 2*4
        per_row = Np * (2 * tt * 4 + 2 * tt * z_bytes + 4 * (2 * 4) + 2 * 4)
        tb = _pick_tb(B, per_row, budget, align=align)

    grid = (pl.cdiv(B, tb), pl.cdiv(T, tt))          # time chunks innermost

    x_spec = pl.BlockSpec((tt, tb, Np), lambda b, t: (t, b, 0))
    st_spec = pl.BlockSpec((tb, Np), lambda b, t: (b, 0))   # resident across t

    out_shape = (
        jax.ShapeDtypeStruct((T, B, Np), z_dtype),   # spike train
        jax.ShapeDtypeStruct((B, Np), jnp.float32),  # final v
        jax.ShapeDtypeStruct((B, Np), jnp.float32),  # final i
    )
    zs, v_T, i_T = pl.pallas_call(
        _lif_li_seq_kernel,
        out_shape=out_shape,
        grid=grid,
        in_specs=[x_spec, st_spec, st_spec],
        out_specs=(x_spec, st_spec, st_spec),
        scratch_shapes=[pltpu.VMEM((tb, Np), jnp.float32),
                        pltpu.VMEM((tb, Np), jnp.float32)],
        compiler_params=pltpu.CompilerParams(
            dimension_semantics=("parallel", "arbitrary"),
            vmem_limit_bytes=limit),
    )(xs_p, v0_p, i0_p)
    if Np != N:
        zs, v_T, i_T = zs[..., :N], v_T[:, :N], i_T[:, :N]
    return zs, v_T, i_T


# --------------------------------------------------------------------------
# Pure-JAX references mirroring the PyTorch loop semantics.
# --------------------------------------------------------------------------
def _reference(x, v, i):
    i_new = i + TAU_SYN_INV * (x - i)
    v_new = v + TAU_MEM_INV * (i_new - v)
    z = (v_new >= V_TH).astype(v_new.dtype)
    v_before = v_new
    v_after = jnp.where(z > 0, V_RESET, v_new)
    _, N = x.shape
    spiked = z > 0
    masked_v = jnp.where(spiked, v_before, -jnp.inf)
    max_v = jnp.max(masked_v, axis=-1, keepdims=True)
    idx = jnp.arange(N)[None, :]
    winner_idx = jnp.min(jnp.where(spiked & (masked_v == max_v), idx, N),
                         axis=-1, keepdims=True)
    winner_mask = idx == winner_idx
    any_spike = jnp.any(spiked, axis=-1, keepdims=True)
    v_final = jnp.where(any_spike,
                        jnp.where(winner_mask, v_after, INHIBITION_STRENGTH),
                        v_after)
    return z, v_final, i_new


def _reference_sequence(xs, v0, i0):
    def step(carry, x):
        v, i = carry
        z, v_new, i_new = _reference(x, v, i)
        return (v_new, i_new), z
    (v_f, i_f), zs = lax.scan(step, (v0, i0), xs)
    return zs, v_f, i_f


if __name__ == "__main__":
    key = jax.random.PRNGKey(0)
    B, N, T = 32, 128, 8                 # batch, neuron_count, timesteps
    kx, kv, ki, ks, kq = jax.random.split(key, 5)
    x = jax.random.uniform(kx, (B, N), jnp.float32, 0.0, 8.0)
    v = jax.random.uniform(kv, (B, N), jnp.float32, 0.0, 0.5)
    i = jax.random.uniform(ki, (B, N), jnp.float32, 0.0, 0.5)

    # --- single-step cell (forward() of the module) ------------------------
    z, new_v, new_i = lateral_inhibition_lif_cell(x, v, i)
    jax.block_until_ready((z, new_v, new_i))
    z_r, v_r, i_r = _reference(x, v, i)
    assert jnp.array_equal(z, z_r), "spike mismatch"
    assert jnp.allclose(new_v, v_r), "v mismatch"
    assert jnp.allclose(new_i, i_r), "i mismatch"

    # --- lane-unaligned neuron count exercises the pad-to-128 path ---------
    B2, N2 = 16, 100
    x2 = jax.random.uniform(kq, (B2, N2), jnp.float32, 0.0, 8.0)
    v2 = jnp.zeros((B2, N2), jnp.float32)
    i2 = jnp.zeros((B2, N2), jnp.float32)
    z2, v2n, i2n = lateral_inhibition_lif_cell(x2, v2, i2)
    jax.block_until_ready((z2, v2n, i2n))
    z2r, v2r, i2r = _reference(x2, v2, i2)
    assert jnp.array_equal(z2, z2r), "padded spike mismatch"
    assert jnp.allclose(v2n, v2r), "padded v mismatch"
    assert jnp.allclose(i2n, i2r), "padded i mismatch"

    # --- time-fused variant: v/i resident in VMEM, bf16 spike stream -------
    xs = jax.random.uniform(ks, (T, B, N), jnp.float32, 0.0, 4.0)
    v0 = jnp.zeros((B, N), jnp.float32)
    i0 = jnp.zeros((B, N), jnp.float32)
    zs, v_T, i_T = lateral_inhibition_lif_sequence(xs, v0, i0,
                                                   z_dtype=jnp.bfloat16)
    jax.block_until_ready((zs, v_T, i_T))
    zs_r, v_Tr, i_Tr = _reference_sequence(xs, v0, i0)
    assert jnp.array_equal(zs.astype(jnp.float32), zs_r), "seq spike mismatch"
    assert jnp.allclose(v_T, v_Tr, atol=1e-5), "seq v mismatch"
    assert jnp.allclose(i_T, i_Tr, atol=1e-5), "seq i mismatch"

    print("KERNEL_OK")
</pallas_src>

<mosaic_0001>
module attributes {stable_mosaic.version = 11 : i64} {
  func.func @_lif_li_kernel(%arg0: i32, %arg1: memref<16x128xf32, #tpu.memory_space<vmem>>, %arg2: memref<16x128xf32, #tpu.memory_space<vmem>>, %arg3: memref<16x128xf32, #tpu.memory_space<vmem>>, %arg4: memref<16x128xf32, #tpu.memory_space<vmem>>, %arg5: memref<16x128xf32, #tpu.memory_space<vmem>>, %arg6: memref<16x128xf32, #tpu.memory_space<vmem>>) attributes {dimension_semantics = [#tpu.dimension_semantics<parallel>], iteration_bounds = array<i64: 2>, scalar_prefetch = 0 : i64, scratch_operands = 0 : i64, tpu.core_type = #tpu.core_type<tc>, window_params = [{transform_indices = @transform_0, window_bounds = array<i64: 16, 128>}, {transform_indices = @transform_1, window_bounds = array<i64: 16, 128>}, {transform_indices = @transform_2, window_bounds = array<i64: 16, 128>}, {transform_indices = @transform_3, window_bounds = array<i64: 16, 128>}, {transform_indices = @transform_4, window_bounds = array<i64: 16, 128>}, {transform_indices = @transform_5, window_bounds = array<i64: 16, 128>}]} {
    %c0 = arith.constant 0 : index
    %c0_0 = arith.constant 0 : index
    %0 = vector.load %arg1[%c0, %c0_0] : memref<16x128xf32, #tpu.memory_space<vmem>>, vector<16x128xf32>
    %c0_1 = arith.constant 0 : index
    %c0_2 = arith.constant 0 : index
    %1 = vector.load %arg2[%c0_1, %c0_2] : memref<16x128xf32, #tpu.memory_space<vmem>>, vector<16x128xf32>
    %c0_3 = arith.constant 0 : index
    %c0_4 = arith.constant 0 : index
    %2 = vector.load %arg3[%c0_3, %c0_4] : memref<16x128xf32, #tpu.memory_space<vmem>>, vector<16x128xf32>
    %3 = arith.subf %0, %2 : vector<16x128xf32>
    %cst = arith.constant 5.000000e-01 : f32
    %4 = vector.broadcast %cst : f32 to vector<16x128xf32>
    %5 = arith.mulf %4, %3 : vector<16x128xf32>
    %6 = arith.addf %2, %5 : vector<16x128xf32>
    %7 = arith.subf %6, %1 : vector<16x128xf32>
    %cst_5 = arith.constant 5.000000e-01 : f32
    %8 = vector.broadcast %cst_5 : f32 to vector<16x128xf32>
    %9 = arith.mulf %8, %7 : vector<16x128xf32>
    %10 = arith.addf %1, %9 : vector<16x128xf32>
    %cst_6 = arith.constant 1.000000e+00 : f32
    %11 = vector.broadcast %cst_6 : f32 to vector<16x128xf32>
    %12 = arith.cmpf oge, %10, %11 : vector<16x128xf32>
    %13 = arith.extui %12 : vector<16x128xi1> to vector<16x128xi32>
    %14 = arith.sitofp %13 : vector<16x128xi32> to vector<16x128xf32>
    %cst_7 = arith.constant 0.000000e+00 : f32
    %15 = vector.broadcast %cst_7 : f32 to vector<16x128xf32>
    %16 = arith.select %12, %15, %10 : vector<16x128xi1>, vector<16x128xf32>
    %cst_8 = arith.constant 0xFF800000 : f32
    %17 = vector.broadcast %cst_8 : f32 to vector<16x128xf32>
    %18 = arith.select %12, %10, %17 : vector<16x128xi1>, vector<16x128xf32>
    %cst_9 = arith.constant dense<0xFF800000> : vector<16xf32>
    %19 = vector.multi_reduction <maximumf>, %18, %cst_9 [1] : vector<16x128xf32> to vector<16xf32>
    %20 = vector.shape_cast %19 : vector<16xf32> to vector<16x1xf32>
    %21 = tpu.iota {dimensions = array<i32: 1>} : vector<16x128xi32>
    %22 = vector.broadcast %20 : vector<16x1xf32> to vector<16x128xf32>
    %23 = arith.cmpf oeq, %18, %22 : vector<16x128xf32>
    %c128_i32 = arith.constant 128 : i32
    %24 = vector.broadcast %c128_i32 : i32 to vector<16x128xi32>
    %25 = arith.select %23, %21, %24 : vector<16x128xi1>, vector<16x128xi32>
    %cst_10 = arith.constant dense<2147483647> : vector<16xi32>
    %26 = vector.multi_reduction <minsi>, %25, %cst_10 [1] : vector<16x128xi32> to vector<16xi32>
    %27 = vector.shape_cast %26 : vector<16xi32> to vector<16x1xi32>
    %28 = vector.broadcast %27 : vector<16x1xi32> to vector<16x128xi32>
    %29 = arith.cmpi eq, %21, %28 : vector<16x128xi32>
    %cst_11 = arith.constant 1.000000e+00 : f32
    %30 = vector.broadcast %cst_11 : f32 to vector<16x1xf32>
    %31 = arith.cmpf oge, %20, %30 : vector<16x1xf32>
    %cst_12 = arith.constant -5.000000e+00 : f32
    %32 = vector.broadcast %cst_12 : f32 to vector<16x128xf32>
    %33 = arith.select %29, %16, %32 : vector<16x128xi1>, vector<16x128xf32>
    %34 = vector.shape_cast %31 : vector<16x1xi1> to vector<16x1xi1>
    %35 = vector.broadcast %34 : vector<16x1xi1> to vector<16x128xi1>
    %36 = arith.select %35, %33, %16 : vector<16x128xi1>, vector<16x128xf32>
    %c0_13 = arith.constant 0 : index
    %c0_14 = arith.constant 0 : index
    %37 = vector.load %arg4[%c0_13, %c0_14] : memref<16x128xf32, #tpu.memory_space<vmem>>, vector<16x128xf32>
    tpu.vector_store %arg4[%c0_13, %c0_14], %14 {strides = array<i32>} : memref<16x128xf32, #tpu.memory_space<vmem>>, vector<16x128xf32>,
    %c0_15 = arith.constant 0 : index
    %c0_16 = arith.constant 0 : index
    %38 = vector.load %arg5[%c0_15, %c0_16] : memref<16x128xf32, #tpu.memory_space<vmem>>, vector<16x128xf32>
    tpu.vector_store %arg5[%c0_15, %c0_16], %36 {strides = array<i32>} : memref<16x128xf32, #tpu.memory_space<vmem>>, vector<16x128xf32>,
    %c0_17 = arith.constant 0 : index
    %c0_18 = arith.constant 0 : index
    %39 = vector.load %arg6[%c0_17, %c0_18] : memref<16x128xf32, #tpu.memory_space<vmem>>, vector<16x128xf32>
    tpu.vector_store %arg6[%c0_17, %c0_18], %6 {strides = array<i32>} : memref<16x128xf32, #tpu.memory_space<vmem>>, vector<16x128xf32>,
    return
  }
  func.func @transform_0(%arg0: i32) -> (i32, i32) {
    %c0_i32 = arith.constant 0 : i32
    %c0_i32_0 = arith.constant 0 : i32
    return %arg0, %c0_i32 : i32, i32
  }
  func.func @transform_1(%arg0: i32) -> (i32, i32) {
    %c0_i32 = arith.constant 0 : i32
    %c0_i32_0 = arith.constant 0 : i32
    return %arg0, %c0_i32 : i32, i32
  }
  func.func @transform_2(%arg0: i32) -> (i32, i32) {
    %c0_i32 = arith.constant 0 : i32
    %c0_i32_0 = arith.constant 0 : i32
    return %arg0, %c0_i32 : i32, i32
  }
  func.func @transform_3(%arg0: i32) -> (i32, i32) {
    %c0_i32 = arith.constant 0 : i32
    %c0_i32_0 = arith.constant 0 : i32
    return %arg0, %c0_i32 : i32, i32
  }
  func.func @transform_4(%arg0: i32) -> (i32, i32) {
    %c0_i32 = arith.constant 0 : i32
    %c0_i32_0 = arith.constant 0 : i32
    return %arg0, %c0_i32 : i32, i32
  }
  func.func @transform_5(%arg0: i32) -> (i32, i32) {
    %c0_i32 = arith.constant 0 : i32
    %c0_i32_0 = arith.constant 0 : i32
    return %arg0, %c0_i32 : i32, i32
  }
}

</mosaic_0001>

<bundles_post_ra>
// kernel: tpu_custom_call.1
= control target key start
LH: loop header
LB: loop body
LE: loop exit
PB: predicated region body
PF: predicated region fallthrough
CT: control target
= control target key end

     0   :  { %s1329_s0 = inlined_call_operand.hbm [shape: f32[32,128], index: 0, kind: input, shape index: {}]   ;;  %s1330_s1 = inlined_call_operand.hbm [shape: f32[32,128], index: 1, kind: input, shape index: {}]   ;;  %s1331_s2 = inlined_call_operand.hbm [shape: f32[32,128], index: 2, kind: input, shape index: {}]   ;;  %s1332_s3 = inlined_call_operand.hbm [shape: f32[32,128], index: 3, kind: output, shape index: {0}]   ;;  %s1333_s4 = inlined_call_operand.hbm [shape: f32[32,128], index: 4, kind: output, shape index: {1}]   ;;  %s1334_s5 = inlined_call_operand.hbm [shape: f32[32,128], index: 5, kind: output, shape index: {2}]  }
   0x1   :  { %1342 = sst [smem:[#allocation19_spill]] %s1329_s0 }
   0x2   :  { %1343 = sst [smem:[#allocation20_spill]] %s1330_s1 }
   0x3   :  { %11 = vsyncpa [#allocation3], 0 }
   0x4   :  { %13 = vsyncpa [#allocation3 + $0x1], 0 }
   0x5   :  { %14 = vsyncpa [#allocation6], 0 }
   0x6   :  { %16 = vsyncpa [#allocation6 + $0x1], 0 }
   0x7   :  { %17 = vsyncpa [#allocation4], 0 }
   0x8   :  { %19 = vsyncpa [#allocation4 + $0x1], 0 }
   0x9   :  { %20 = vsyncpa [#allocation10], 0 }
   0xa   :  { %22 = vsyncpa [#allocation10 + $0x1], 0  ;;  %s1039_s18 = smov 0   ;;  %s1041_s19 = smov 0  }
   0xb   :  { %s1043_s20 = smov 0   ;;  %s1045_s21 = smov 0  }
   0xc LB: > { %1344 = sst [smem:[#allocation16_spill]] %s998_s20  ;;  %s1060_s22 = sadd.s32 4294967295, %s1002_s21   ;;  %s1002_s21 = sphi %s1045_s21, %s1357_s21   ;;  %s998_s20 = sphi %s1043_s20, %s1359_s20   ;;  %s994_s19 = sphi %s1041_s19, %s1361_s19   ;;  %s990_s18 = sphi %s1039_s18, %s1360_s18  }
   0xd   : > { %s1335_s23 = sadd.s32 4294967294, %s1002_s21   ;;  %s1064_s24 = sadd.s32 1, %s1002_s21  }
   0xe   : > { %1345 = sst [smem:[#allocation17_spill]] %s1064_s24  ;;  %s35_s25 = sadd.s32 1, %s998_s20 }
   0xf   : > { %s32_s26 = ssub.s32 %s1002_s21, %s1064_s24  ;;  %p42_p0 = scmp.ne.s32.totalorder %s998_s20, %s994_s19 }
  0x10   : > { %p33_p1 = scmp.eq.s32.totalorder %s32_s26, 0  ;;  %p43_p2 = scmp.eq.s32.totalorder %s1002_s21, 0 }
  0x11   : > { %p48_p3 = scmp.ne.s32.totalorder %s994_s19, %s990_s18  ;;  %p49_p4 = scmp.eq.s32.totalorder %s1060_s22, 0 }
  0x12   : > { %s1076_s27 = scalar_select %p33_p1, %s998_s20, %s35_s25  }
  0x13   : > { %p44_p5 = por %p43_p2, %p42_p0  ;;  %p1078_p6 = por %p49_p4, %p48_p3 }
  0x14   : > { %1346 = sst [smem:[#allocation18_spill]] %s1076_s27  ;;  %p124_p7 = scmp.eq.s32.totalorder %s1060_s22, 1 }
  0x15   : > { %p130_p8 = scmp.eq.s32.totalorder %s1335_s23, 1  ;;  %p675_p9 = scmp.ge.s32.totalorder %s1002_s21, 2 }
  0x16   : > { %p743_p10 = scmp.lt.s32.totalorder %s1002_s21, 2  ;;  %p1087_p11 = por %p124_p7, %p42_p0 }
  0x17   : > { %p1091_p12 = por %p130_p8, %p48_p3  ;;  %s1336_s6 = sand.u32 1, %s998_s20  }
  0x18   : > { %s1097_s7 = sshll.u32 %s1002_s21, 4  ;;  %s1101_s8 = sshll.u32 %s1336_s6, 4 }
  0x19   : > { %p1103_p13 = pnand %p743_p10, %p44_p5  ;;  %s224_s10 = sand.u32 1, %s1002_s21  }
  0x1a   : > { %s1351_s1 = sld [smem:[#allocation20_spill]]  ;;  %s228_s14 = scalar_lea.vmem [#allocation5], %s1101_s8 }
  0x1b   : > { %s236_s15 = sshll.u32 %s228_s14, 4  ;;  %p685_p0 = scmp.ge.s32.totalorder %s1002_s21, 1  ;;  %s237_s15 = int_to_ptr.vmem [resolvable:$true] %s236_s15 }
  0x1c   : > { %s1114_s17 = scalar_lea.sflag [#allocation6], %s224_s10  ;;  %p786_p2 = pneg %p1103_p13 }
  0x20   : > { %s233_s13 = scalar_lea.hbm %s1351_s1, %s1097_s7  ;;  %s789_s14 = scalar_lea.hbm %s1351_s1, 32 }
  0x21   : > { %s234_s16 = sshll.u32 %s233_s13, 4  ;;  %s235_s16 = int_to_ptr.hbm [resolvable:$true] %s234_s16 }
  0x22   : > { %s782_s25 = sshra.s32 %s235_s16, 4  ;;  %s783_s25 = int_to_ptr.hbm [resolvable:$true] %s782_s25 }
  0x23   : > { %s784_s26 = scalar_lea.hbm %s783_s25, 16  ;;  %p790_p5 = scmp.lt.s32.totalorder %s783_s25, %s1351_s1 }
  0x24   : > { %p785_p1 = scmp.ne.s32.totalorder %s783_s25, %s784_s26  ;;  %p791_p7 = scmp.lt.s32.totalorder %s789_s14, %s784_s26 }
  0x26   : > { %p787_p3 = pnand %p786_p2, %p785_p1  ;;  %p792_p8 = por %p791_p7, %p790_p5 }
  0x28   : > { %p788_p4 = pneg %p787_p3 }
  0x2a   : > { %p793_p10 = pnand %p792_p8, %p788_p4 }
  0x2c   : > { %796 = shalt.err (!%p793_p10)
}
  0x2d   : > { %s1339_s10 = smov 128   ;;  %s1005_s6 = smov 8  }
  0x2e   : > { %729 = dma.hbm_to_vmem [thread:$0]  (!%p1103_p13), %s235_s16, 256, %s237_s15, %s1114_s17, %s1339_s10, %s1339_s10, %s1005_s6  }
  0x2f   : > { %p266_p1 = scmp.lt.s32.totalorder %s1002_s21, 3  ;;  %s1352_s0 = sld [smem:[#allocation19_spill]] }
  0x30   : > { %s206_s14 = scalar_lea.vmem [#allocation2], %s1101_s8  ;;  %s1354_s1 = sand.u32 1, %s998_s20  }
  0x31   : > { %p1140_p3 = pnand %p685_p0, %p266_p1  ;;  %s214_s13 = sshll.u32 %s206_s14, 4  ;;  %s215_s13 = int_to_ptr.vmem [resolvable:$true] %s214_s13 }
  0x32   : > { %s203_s27 = scalar_lea.sflag [#allocation3], %s1354_s1 }
  0x35   : > { %s211_s26 = scalar_lea.hbm %s1352_s0, %s1097_s7  ;;  %s819_s25 = scalar_lea.hbm %s1352_s0, 32 }
  0x36   : > { %s212_s12 = sshll.u32 %s211_s26, 4  ;;  %s213_s12 = int_to_ptr.hbm [resolvable:$true] %s212_s12 }
  0x37   : > { %s812_s24 = sshra.s32 %s213_s12, 4  ;;  %s813_s24 = int_to_ptr.hbm [resolvable:$true] %s812_s24 }
  0x38   : > { %s814_s15 = scalar_lea.hbm %s813_s24, 16  ;;  %p820_p0 = scmp.lt.s32.totalorder %s813_s24, %s1352_s0 }
  0x39   : > { %p815_p4 = scmp.ne.s32.totalorder %s813_s24, %s814_s15  ;;  %p821_p8 = scmp.lt.s32.totalorder %s819_s25, %s814_s15 }
  0x3b   : > { %p817_p5 = pnand %p815_p4, %p786_p2  ;;  %p822_p10 = por %p821_p8, %p820_p0 }
  0x3d   : > { %p818_p7 = pneg %p817_p5 }
  0x3f   : > { %p823_p1 = pnand %p822_p10, %p818_p7 }
  0x41   : > { %826 = shalt.err (!%p823_p1)
}
  0x42   : > { %s1355_s1 = smov 128   ;;  %s255_s23 = scalar_lea.hbm %s1331_s2, %s1097_s7 }
  0x43   : > { %726 = dma.hbm_to_vmem [thread:$0]  (!%p1103_p13), %s213_s12, 256, %s215_s13, %s203_s27, %s1355_s1, %s1355_s1, %s1005_s6  }
  0x44   : > { %s250_s20 = scalar_lea.vmem [#allocation7], %s1101_s8  ;;  %s256_s24 = sshll.u32 %s255_s23, 4  ;;  %s257_s24 = int_to_ptr.hbm [resolvable:$true] %s256_s24 }
  0x45   : > { %s258_s10 = sshll.u32 %s250_s20, 4  ;;  %s842_s15 = sshra.s32 %s257_s24, 4  ;;  %s259_s10 = int_to_ptr.vmem [resolvable:$true] %s258_s10  ;;  %s843_s15 = int_to_ptr.hbm [resolvable:$true] %s842_s15 }
  0x46   : > { %s844_s25 = scalar_lea.hbm %s843_s15, 16  ;;  %s849_s27 = scalar_lea.hbm %s1331_s2, 32 }
  0x47   : > { %p845_p4 = scmp.ne.s32.totalorder %s843_s15, %s844_s25  ;;  %p850_p0 = scmp.lt.s32.totalorder %s843_s15, %s1331_s2 }
  0x48   : > { %p851_p8 = scmp.lt.s32.totalorder %s849_s27, %s844_s25 }
  0x49   : > { %p847_p5 = pnand %p845_p4, %p786_p2 }
  0x4a   : > { %p852_p10 = por %p851_p8, %p850_p0 }
  0x4b   : > { %p848_p7 = pneg %p847_p5 }
  0x4d   : > { %p853_p1 = pnand %p852_p10, %p848_p7 }
  0x4f   : > { %856 = shalt.err (!%p853_p1)
}
  0x50   : > { %732 = dma.hbm_to_vmem [thread:$0]  (!%p1103_p13), %s257_s24, 256, %s259_s10, %s1114_s17, %s1355_s1, %s1355_s1, %s1005_s6  }
  0x51   : > { %270 = sbr.rel (%p1140_p3) target bundleno = 493 (0x1ed), region = 32  ;;  %s1184_s0 = sand.u32 (!%p1140_p3), 1, %s994_s19  }
  0x52   : > { %s1187_s20 = sshll.u32 (!%p1140_p3), %s1184_s0, 4  ;;  %s273_s7 = scalar_lea.sflag (!%p1140_p3), [#allocation3], %s1184_s0 }
  0x53   : > { %s276_s8 = scalar_lea.vmem (!%p1140_p3), [#allocation2], %s1187_s20 }
  0x56   : > { %973 = dma.done.wait (%p1078_p6), %s273_s7, 256  }
  0x57   : > { %975 = vsyncadd (%p1078_p6), %s273_s7, 4294967040  ;;  %s282_s6 = sand.u32 1, %s1060_s22   ;;  %s286_s17 = scalar_lea.vmem [#allocation5], %s1187_s20 }
  0x58   : > { %s283_s9 = scalar_lea.sflag [#allocation6], %s282_s6 }
  0x59   : > { %977 = dma.done.wait (%p1078_p6), %s283_s9, 512  }
  0x5a   : > { %979 = vsyncadd (%p1078_p6), %s283_s9, 4294966784  ;;  %v350_v0 = vld [vmem:[%s276_s8] sm:$0xff]  ;;  %s296_s11 = scalar_lea.vmem [#allocation7], %s1187_s20  ;;  %v351_v3 = vld [vmem:[%s276_s8 + $0x8] sm:$0xff]  ;;  %s1205_s1 = scalar_lea.vmem [#allocation11], %s1187_s20  ;;  %v1006_v19 = vmov 0.0   ;;  %v382_v25 = vlaneseq }
  0x5b   : > { %v354_v1 = vld [vmem:[%s296_s11] sm:$0xff]  ;;  %v355_v4 = vld [vmem:[%s296_s11 + $0x8] sm:$0xff]  ;;  %s1212_s28 = scalar_lea.vmem [#allocation8], %s1187_s20  ;;  %s1227_s16 = sshll.u32 %s1060_s22, 4 }
  0x5c   : > { %v356_v2 = vsub.f32 %v350_v0, %v354_v1  ;;  %v357_v5 = vsub.f32 %v351_v3, %v355_v4  ;;  %v352_v7 = vld [vmem:[%s286_s17] sm:$0xff]  ;;  %v353_v10 = vld [vmem:[%s286_s17 + $0x8] sm:$0xff]  ;;  %v1218_v26 = vand.u32 127, %v382_v25  ;;  %s457_s14 = sshll.u32 %s1212_s28, 4  ;;  %s456_s24 = scalar_lea.hbm %s1332_s3, %s1227_s16  ;;  %s458_s14 = int_to_ptr.vmem [resolvable:$true] %s457_s14 }
  0x5d   : > { %s459_s15 = sshll.u32 %s456_s24, 4  ;;  %s435_s25 = scalar_lea.sflag [#allocation4], %s1184_s0  ;;  %s460_s15 = int_to_ptr.hbm [resolvable:$true] %s459_s15 }
  0x5e   : > { %v358_v6 = vmul.f32 0.5, %v356_v2  ;;  %v359_v8 = vmul.f32 0.5, %v357_v5  ;;  %s886_s26 = sshra.s32 %s460_s15, 4  ;;  %s892_s7 = scalar_lea.hbm %s1332_s3, 32  ;;  %s887_s26 = int_to_ptr.hbm [resolvable:$true] %s886_s26 }
  0x5f   : > { %s888_s27 = scalar_lea.hbm %s887_s26, 16  ;;  %p893_p3 = scmp.lt.s32.totalorder %s887_s26, %s1332_s3 }
  0x60   : > { %v360_v9 = vadd.f32 %v358_v6, %v354_v1  ;;  %v361_v11 = vadd.f32 %v359_v8, %v355_v4  ;;  %p889_p6 = scmp.ne.s32.totalorder %s887_s26, %s888_s27  ;;  %p894_p4 = scmp.lt.s32.totalorder %s892_s7, %s888_s27 }
  0x62   : > { %v362_v12 = vsub.f32 %v360_v9, %v352_v7  ;;  %432 = vst [vmem:[%s1205_s1] sm:$0xff] %v360_v9  ;;  %v363_v13 = vsub.f32 %v361_v11, %v353_v10  ;;  %p890_p13 = pnand %p889_p6, %p1087_p11  ;;  %p895_p5 = por %p894_p4, %p893_p3 }
  0x63   : > { %433 = vst [vmem:[%s1205_s1 + $0x8] sm:$0xff] %v361_v11 }
  0x64   : > { %v364_v14 = vmul.f32 0.5, %v362_v12  ;;  %v365_v15 = vmul.f32 0.5, %v363_v13  ;;  %p891_p2 = pneg %p890_p13 }
  0x66   : > { %v366_v16 = vadd.f32 %v364_v14, %v352_v7  ;;  %v367_v17 = vadd.f32 %v365_v15, %v353_v10  ;;  %p896_p7 = pnand %p895_p5, %p891_p2 }
  0x68   : > { %vm368_vm0 = vcmp.ge.f32.partialorder %v366_v16, 1.0  ;;  %vm369_vm1 = vcmp.ge.f32.partialorder %v367_v17, 1.0 }
  0x69   : > { %v376_v18 = vsel %vm368_vm0, %v366_v16, -inf  ;;  %v692_v20 = vsel %vm368_vm0, 1.0, %v1006_v19  ;;  %v1209_v21 = vsel %vm368_vm0, 0.0, %v366_v16  ;;  %v693_v22 = vsel %vm369_vm1, 1.0, %v1006_v19 }
  0x6a   : > { %378 = vmax.xlane.f32.xlu0 %v376_v18  ;;  %428 = vst [vmem:[%s1212_s28] sm:$0xff] %v692_v20  ;;  %v1215_v23 = vsel %vm369_vm1, 0.0, %v367_v17  ;;  %v377_v24 = vsel %vm369_vm1, %v367_v17, -inf }
  0x6b   : > { %429 = vst [vmem:[%s1212_s28 + $0x8] sm:$0xff] %v693_v22 }
  0x72   : > { %380 = vmax.xlane.f32.xlu0 %v377_v24 }
  0xdd   : > { %v379_v27 = vpop.xlane.xlu0 %378 }
  0xde   : > { %vm384_vm2 = vcmp.eq.f32.partialorder %v376_v18, %v379_v27 }
  0xdf   : > { %v386_v28 = vsel %vm384_vm2, %v1218_v26, 128 }
  0xe0   : > { %v389_v29 = vshra.s32 %v386_v28, 16  ;;  %v388_v35 = vand.u32 65535, %v386_v28 }
  0xe2   : > { %v391_v30 = vcvt.s32.f32 %v389_v29  ;;  %v390_v37 = vcvt.s32.f32 %v388_v35 }
  0xe4   : > { %392 = vmin.xlane.f32.xlu1 %v391_v30 }
  0xe5   : > { %v1221_v31 = vpop.xlane.xlu0 %380 }
  0xe6   : > { %vm385_vm3 = vcmp.eq.f32.partialorder %v377_v24, %v1221_v31 }
  0xe7   : > { %v387_v32 = vsel %vm385_vm3, %v1218_v26, 128 }
  0xe8   : > { %v403_v33 = vshra.s32 %v387_v32, 16  ;;  %v402_v39 = vand.u32 65535, %v387_v32 }
  0xea   : > { %v405_v34 = vcvt.s32.f32 %v403_v33  ;;  %v404_v41 = vcvt.s32.f32 %v402_v39 }
  0xec   : > { %406 = vmin.xlane.f32.xlu1 %v405_v34 }
 0x157   : > { %v393_v36 = vpop.xlane.xlu1 %392 }
 0x158   : > { %vm394_vm4 = vcmp.eq.f32.partialorder %v391_v30, %v393_v36 }
 0x159   : > { %v395_v38 = vsel %vm394_vm4, %v390_v37, inf }
 0x15a   : > { %396 = vmin.xlane.f32.xlu2 %v395_v38 }
 0x15f   : > { %v407_v40 = vpop.xlane.xlu1 %406 }
 0x160   : > { %vm408_vm5 = vcmp.eq.f32.partialorder %v405_v34, %v407_v40 }
 0x161   : > { %v409_v42 = vsel %vm408_vm5, %v404_v41, inf }
 0x162   : > { %899 = shalt.err (!%p896_p7)
}
 0x163   : > { %s1007_s0 = smov 128   ;;  %s1008_s17 = smov 8   ;;  %410 = vmin.xlane.f32.xlu2 %v409_v42  ;;  %v399_v43 = vcvt.f32.s32 %v393_v36  ;;  %v413_v48 = vcvt.f32.s32 %v407_v40  ;;  %vm418_vm7 = vcmp.ge.f32.partialorder %v379_v27, 1.0  ;;  %vm419_vm9 = vcmp.ge.f32.partialorder %v1221_v31, 1.0 }
 0x164   : > { %717 = dma.vmem_to_hbm [thread:$0]  (%p1087_p11), %s458_s14, 256, %s460_s15, %s435_s25, %s1007_s0, %s1007_s0, %s1008_s17  }
 0x165   : > { %v400_v45 = vshll.u32 %v399_v43, 16  ;;  %s336_s11 = scalar_lea.vmem [#allocation9], %s1187_s20  ;;  %s473_s23 = scalar_lea.hbm %s1333_s4, %s1227_s16  ;;  %v414_v52 = vshll.u32 %v413_v48, 16 }
 0x166   : > { %s490_s15 = scalar_lea.hbm %s1334_s5, %s1227_s16  ;;  %s474_s25 = sshll.u32 %s336_s11, 4  ;;  %s475_s25 = int_to_ptr.vmem [resolvable:$true] %s474_s25 }
 0x167   : > { %s1259_s26 = sshll.u32 %s473_s23, 4  ;;  %s491_s27 = sshll.u32 %s1205_s1, 4  ;;  %s477_s26 = int_to_ptr.hbm [resolvable:$true] %s1259_s26  ;;  %s1268_s27 = int_to_ptr.vmem [resolvable:$true] %s491_s27 }
 0x168   : > { %s1262_s20 = sshll.u32 %s490_s15, 4  ;;  %s1274_s1 = scalar_lea.sflag [#allocation10], %s282_s6  ;;  %s494_s20 = int_to_ptr.hbm [resolvable:$true] %s1262_s20 }
 0x169   : > { %s914_s16 = sshra.s32 %s477_s26, 4  ;;  %s920_s8 = scalar_lea.hbm %s1333_s4, 32  ;;  %s915_s16 = int_to_ptr.hbm [resolvable:$true] %s914_s16 }
 0x16a   : > { %s916_s12 = scalar_lea.hbm %s915_s16, 16  ;;  %p921_p1 = scmp.lt.s32.totalorder %s915_s16, %s1333_s4 }
 0x16b   : > { %p917_p0 = scmp.ne.s32.totalorder %s915_s16, %s916_s12  ;;  %p922_p6 = scmp.lt.s32.totalorder %s920_s8, %s916_s12 }
 0x16d   : > { %p918_p8 = pnand %p917_p0, %p1087_p11  ;;  %p923_p13 = por %p922_p6, %p921_p1 }
 0x16f   : > { %p919_p10 = pneg %p918_p8 }
 0x171   : > { %p924_p2 = pnand %p923_p13, %p919_p10 }
 0x1cd   : > { %v397_v44 = vpop.xlane.xlu2 %396 }
 0x1ce   : > { %v398_v46 = vcvt.f32.s32 %v397_v44 }
 0x1d0   : > { %v401_v47 = vadd.s32 %v400_v45, %v398_v46 }
 0x1d2   : > { %vm416_vm6 = vcmp.eq.s32.totalorder %v1218_v26, %v401_v47 }
 0x1d3   : > { %v420_v49 = vsel %vm416_vm6, %v1209_v21, -5.0 }
 0x1d4   : > { %v426_v50 = vsel %vm418_vm7, %v420_v49, %v1209_v21 }
 0x1d5   : > { %430 = vst [vmem:[%s336_s11] sm:$0xff] %v426_v50 }
 0x1d6   : > { %v411_v51 = vpop.xlane.xlu2 %410 }
 0x1d7   : > { %v412_v53 = vcvt.f32.s32 %v411_v51 }
 0x1d9   : > { %v415_v54 = vadd.s32 %v414_v52, %v412_v53 }
 0x1db   : > { %vm417_vm8 = vcmp.eq.s32.totalorder %v1218_v26, %v415_v54 }
 0x1dc   : > { %v421_v55 = vsel %vm417_vm8, %v1215_v23, -5.0 }
 0x1dd   : > { %v427_v56 = vsel %vm419_vm9, %v421_v55, %v1215_v23 }
 0x1de   : > { %431 = vst [vmem:[%s336_s11 + $0x8] sm:$0xff] %v427_v56 }
 0x1df   : > { %927 = shalt.err (!%p924_p2)
}
 0x1e0   : > { %718 = dma.vmem_to_hbm [thread:$0]  (%p1087_p11), %s475_s25, 256, %s477_s26, %s1274_s1, %s1007_s0, %s1007_s0, %s1008_s17  }
 0x1e1   : > { %s942_s22 = sshra.s32 %s494_s20, 4  ;;  %s948_s23 = scalar_lea.hbm %s1334_s5, 32  ;;  %s943_s22 = int_to_ptr.hbm [resolvable:$true] %s942_s22 }
 0x1e2   : > { %s944_s6 = scalar_lea.hbm %s943_s22, 16  ;;  %p949_p7 = scmp.lt.s32.totalorder %s943_s22, %s1334_s5 }
 0x1e3   : > { %p945_p3 = scmp.ne.s32.totalorder %s943_s22, %s944_s6  ;;  %p950_p0 = scmp.lt.s32.totalorder %s948_s23, %s944_s6 }
 0x1e5   : > { %p946_p4 = pnand %p945_p3, %p1087_p11  ;;  %p951_p8 = por %p950_p0, %p949_p7 }
 0x1e7   : > { %p947_p5 = pneg %p946_p4 }
 0x1e9   : > { %p952_p10 = pnand %p951_p8, %p947_p5 }
 0x1eb   : > { %955 = shalt.err (!%p952_p10)
}
 0x1ec   : > { %719 = dma.vmem_to_hbm [thread:$0]  (%p1087_p11), %s1268_s27, 256, %s494_s20, %s1274_s1, %s1007_s0, %s1007_s0, %s1008_s17  }
 0x1ed PF: > { %s508_s15 = sand.u32 1, %s990_s18   ;;  %p734_p1 = pnand %p675_p9, %p1091_p12 }
 0x1ee   : > { %s509_s25 = scalar_lea.sflag [#allocation4], %s508_s15 }
 0x1ef   : > { %p735_p6 = pneg %p734_p1 }
 0x1f1   : > { %981 = dma.done.wait (%p735_p6), %s509_s25, 256  }
 0x1f2   : > { %983 = vsyncadd (%p735_p6), %s509_s25, 4294967040  ;;  %s1356_s29 = sadd.s32 4294967294, %s1002_s21  }
 0x1f3   : > { %s518_s26 = sand.u32 1, %s1356_s29  }
 0x1f4   : > { %s519_s16 = scalar_lea.sflag [#allocation10], %s518_s26 }
 0x1f5   : > { %985 = dma.done.wait (%p735_p6), %s519_s16, 512  }
 0x1f6   : > { %987 = vsyncadd (%p735_p6), %s519_s16, 4294966784  ;;  %s1357_s21 = sld [smem:[#allocation17_spill]]  ;;  %s1360_s18 = smov %s994_s19 }
 0x1f7   : > { %s1358_s0 = sld [smem:[#allocation16_spill]] }
 0x1f8   : > { %s1359_s20 = sld [smem:[#allocation18_spill]] }
 0x1fc   : > { %p25_p11 = scmp.ge.s32.totalorder %s1357_s21, 4  }
 0x1fd   : > { %s1361_s19 = smov %s1358_s0 }
 0x1fe   :  { %27 = sbr.rel (!%p25_p11) target bundleno = 12 (0xc), region = 133 }
 0x203   :  { %535 = vsyncpa [#allocation3], 1 }
 0x204   :  { %537 = vsyncpa [#allocation3 + $0x1], 1 }
 0x205   :  { %538 = vsyncpa [#allocation6], 1 }
 0x206   :  { %540 = vsyncpa [#allocation6 + $0x1], 1 }
 0x207   :  { %541 = vsyncpa [#allocation4], 1 }
 0x208   :  { %543 = vsyncpa [#allocation4 + $0x1], 1 }
 0x209   :  { %544 = vsyncpa [#allocation10], 1 }
 0x20a   :  { %546 = vsyncpa [#allocation10 + $0x1], 1 }

</bundles_post_ra>
